<compile_context>
chip_gen: v7x
topology: tpu7x:2x2x1
jax: 0.10.0
libtpu: 0.0.40
codegen_flags: <defaults>
</compile_context>

<pallas_src>
import jax
import jax.numpy as jnp
from jax.experimental import pallas as pl
from jax.experimental.pallas import tpu as pltpu

PATCH_SIZE = 16
CHANNELS = 3
PATCH_DIM = PATCH_SIZE ** 2 * CHANNELS    # 768


def embedding_kernel(patch_ref, pos_ref, row0_ref, out_ref):
    """patch_ref: (bb, N, D)   patch embeddings for this batch block (streamed)
       pos_ref:   (1, N, D)    positional embedding for tokens 1..N (VMEM-resident)
       row0_ref:  (1, 1, D)    cls_token + pos_embedding[0]        (VMEM-resident)
       out_ref:   (bb, N+1, D) output token slab
    """
    bb, _, D = out_ref.shape
    # Token 0: class-token row (identical for every batch element).
    out_ref[:, 0:1, :] = jnp.broadcast_to(row0_ref[...], (bb, 1, D))
    # Tokens 1..N: patch embedding + positional embedding (pos broadcast over bb).
    # The +1 shift is absorbed here by a static-offset slice store (mem-bound kernel:
    # the sublane realignment is hidden under the DMA).
    out_ref[:, 1:, :] = patch_ref[...] + pos_ref[...]


def _pick_batch_block(B, N, T, D, itemsize, pref, vmem_budget):
    """Largest divisor of B that is <= pref and keeps the double-buffered working set
    under `vmem_budget`, preferring choices that leave >= 2 grid steps (v7x dual-TC)."""
    def working_set(bb):
        per_step = (bb * N * D) + (N * D) + D + (bb * T * D)
        return 2 * per_step * itemsize          # double-buffered
    divisors = [d for d in range(1, B + 1) if B % d == 0]
    fitting = [d for d in divisors if d <= pref and working_set(d) <= vmem_budget]
    if not fitting:
        fitting = [1]
    two_step = [d for d in fitting if B // d >= 2]
    return max(two_step) if two_step else max(fitting)


def vit_embedding(x, cls_token, pos_embedding, *, batch_block=8):
    """Forward pass of the ViT Embedding module.

    x:             (B, C, H, W) float32 images
    cls_token:     (1, 1, D)
    pos_embedding: (1, T, D) with T = (H/P)*(W/P) + 1 and D = C*P*P
    returns        (B, T, D)
    """
    B, C, H, W = x.shape
    P = PATCH_SIZE
    assert H % P == 0 and W % P == 0, "image size must be divisible by patch size"
    Hp, Wp = H // P, W // P
    N = Hp * Wp
    D = C * P * P
    T = N + 1
    assert D % 128 == 0
    assert pos_embedding.shape == (1, T, D)
    assert cls_token.shape == (1, 1, D)

    dtype = x.dtype
    itemsize = jnp.dtype(dtype).itemsize

    # --- patch unfold (pure layout transform; wrapper-side so D is lane-dense) ---
    # TODO(synk): the unfold is layout plumbing with no arithmetic; Mosaic has no clean
    # in-kernel equivalent of the (C,P,P)->D lane gather, so it stays as a jnp reshape.
    patches = (
        x.reshape(B, C, Hp, P, Wp, P)
        .transpose(0, 2, 4, 1, 3, 5)
        .reshape(B, N, D)
    )

    pos = pos_embedding.astype(dtype)
    row0 = cls_token.astype(dtype) + pos[:, 0:1, :]              # (1, 1, D)
    pos_patch = pos[:, 1:, :]                                    # (1, N, D)

    bb = _pick_batch_block(B, N, T, D, itemsize, batch_block, vmem_budget=44 << 20)
    nb = B // bb

    # Scoped-VMEM limit from the actual working set: >= 32 MiB (lifts v5e's 16 MiB
    # default), <= 48 MiB (headroom under v7x's 64 MiB physical VMEM).
    per_step = ((bb * N * D) + (N * D) + D + (bb * T * D)) * itemsize
    vmem_limit = int(min(48 << 20, max(32 << 20, 2 * per_step + (2 << 20))))

    return pl.pallas_call(
        embedding_kernel,
        out_shape=jax.ShapeDtypeStruct((B, T, D), dtype),
        grid=(nb,),
        in_specs=[
            pl.BlockSpec((bb, N, D), lambda b: (b, 0, 0)),   # patch tokens (streamed)
            pl.BlockSpec((1, N, D), lambda b: (0, 0, 0)),    # pos[1:]       (resident)
            pl.BlockSpec((1, 1, D), lambda b: (0, 0, 0)),    # cls + pos[0]  (resident)
        ],
        out_specs=pl.BlockSpec((bb, T, D), lambda b: (b, 0, 0)),
        compiler_params=pltpu.CompilerParams(
            dimension_semantics=("parallel",),
            vmem_limit_bytes=vmem_limit,
        ),
    )(patches, pos_patch, row0)


def ref_embedding(x, cls_token, pos_embedding):
    """Pure-JAX reference mirroring the PyTorch forward (independent patchify)."""
    B, C, H, W = x.shape
    P = PATCH_SIZE
    rows = []
    for i in range(H // P):
        for j in range(W // P):
            rows.append(
                x[:, :, i * P:(i + 1) * P, j * P:(j + 1) * P].reshape(B, 1, -1))
    patches = jnp.concatenate(rows, axis=1)                      # (B, N, C*P*P)
    cls = jnp.broadcast_to(cls_token, (B, 1, patches.shape[-1]))
    tok = jnp.concatenate([cls, patches], axis=1)                # (B, T, D)
    return tok + pos_embedding


if __name__ == "__main__":
    key = jax.random.PRNGKey(0)
    kx, kc, kp = jax.random.split(key, 3)

    # Small shapes consistent with the module: 64x64 image, 16x16 patches ->
    # 16 patch tokens + 1 class token, patch_dim = 3 * 16 * 16 = 768.
    B, C, H, W = 2, CHANNELS, 64, 64
    N = (H // PATCH_SIZE) * (W // PATCH_SIZE)
    T = N + 1
    D = PATCH_DIM

    x = jax.random.normal(kx, (B, C, H, W), jnp.float32)
    cls_token = jax.random.normal(kc, (1, 1, D), jnp.float32)
    pos_embedding = jax.random.normal(kp, (1, T, D), jnp.float32)

    run = jax.jit(vit_embedding)
    out = jax.block_until_ready(run(x, cls_token, pos_embedding))

    ref = ref_embedding(x, cls_token, pos_embedding)
    assert out.shape == (B, T, D)
    assert jnp.allclose(out, ref, atol=1e-5, rtol=1e-5), float(
        jnp.max(jnp.abs(out - ref)))

    print("KERNEL_OK")
</pallas_src>

<mosaic_0001>
module attributes {stable_mosaic.version = 11 : i64} {
  func.func @embedding_kernel(%arg0: i32, %arg1: memref<1x16x768xf32, #tpu.memory_space<vmem>>, %arg2: memref<1x16x768xf32, #tpu.memory_space<vmem>>, %arg3: memref<1x1x768xf32, #tpu.memory_space<vmem>>, %arg4: memref<1x17x768xf32, #tpu.memory_space<vmem>>) attributes {dimension_semantics = [#tpu.dimension_semantics<parallel>], iteration_bounds = array<i64: 2>, scalar_prefetch = 0 : i64, scratch_operands = 0 : i64, tpu.core_type = #tpu.core_type<tc>, window_params = [{transform_indices = @transform_0, window_bounds = array<i64: 1, 16, 768>}, {pipeline_mode = #tpu.pipeline_mode<synchronous>, transform_indices = @transform_1, window_bounds = array<i64: 1, 16, 768>}, {pipeline_mode = #tpu.pipeline_mode<synchronous>, transform_indices = @transform_2, window_bounds = array<i64: 1, 1, 768>}, {transform_indices = @transform_3, window_bounds = array<i64: 1, 17, 768>}]} {
    %c0 = arith.constant 0 : index
    %c0_0 = arith.constant 0 : index
    %c0_1 = arith.constant 0 : index
    %0 = vector.load %arg3[%c0, %c0_0, %c0_1] : memref<1x1x768xf32, #tpu.memory_space<vmem>>, vector<1x1x768xf32>
    %c0_2 = arith.constant 0 : index
    %c0_3 = arith.constant 0 : index
    %c0_4 = arith.constant 0 : index
    %1 = vector.load %arg4[%c0_2, %c0_3, %c0_4] : memref<1x17x768xf32, #tpu.memory_space<vmem>>, vector<1x1x768xf32>
    tpu.vector_store %arg4[%c0_2, %c0_3, %c0_4], %0 {strides = array<i32>} : memref<1x17x768xf32, #tpu.memory_space<vmem>>, vector<1x1x768xf32>,
    %c0_5 = arith.constant 0 : index
    %c0_6 = arith.constant 0 : index
    %c0_7 = arith.constant 0 : index
    %2 = vector.load %arg1[%c0_5, %c0_6, %c0_7] : memref<1x16x768xf32, #tpu.memory_space<vmem>>, vector<1x16x768xf32>
    %c0_8 = arith.constant 0 : index
    %c0_9 = arith.constant 0 : index
    %c0_10 = arith.constant 0 : index
    %3 = vector.load %arg2[%c0_8, %c0_9, %c0_10] : memref<1x16x768xf32, #tpu.memory_space<vmem>>, vector<1x16x768xf32>
    %4 = arith.addf %2, %3 : vector<1x16x768xf32>
    %c0_11 = arith.constant 0 : index
    %c1 = arith.constant 1 : index
    %c0_12 = arith.constant 0 : index
    %5 = vector.load %arg4[%c0_11, %c1, %c0_12] : memref<1x17x768xf32, #tpu.memory_space<vmem>>, vector<1x16x768xf32>
    tpu.vector_store %arg4[%c0_11, %c1, %c0_12], %4 {strides = array<i32>} : memref<1x17x768xf32, #tpu.memory_space<vmem>>, vector<1x16x768xf32>,
    return
  }
  func.func @transform_0(%arg0: i32) -> (i32, i32, i32) {
    %c0_i32 = arith.constant 0 : i32
    %c0_i32_0 = arith.constant 0 : i32
    %c0_i32_1 = arith.constant 0 : i32
    return %arg0, %c0_i32, %c0_i32_0 : i32, i32, i32
  }
  func.func @transform_1(%arg0: i32) -> (i32, i32, i32) {
    %c0_i32 = arith.constant 0 : i32
    %c0_i32_0 = arith.constant 0 : i32
    %c0_i32_1 = arith.constant 0 : i32
    %c0_i32_2 = arith.constant 0 : i32
    return %c0_i32, %c0_i32_0, %c0_i32_1 : i32, i32, i32
  }
  func.func @transform_2(%arg0: i32) -> (i32, i32, i32) {
    %c0_i32 = arith.constant 0 : i32
    %c0_i32_0 = arith.constant 0 : i32
    %c0_i32_1 = arith.constant 0 : i32
    %c0_i32_2 = arith.constant 0 : i32
    return %c0_i32, %c0_i32_0, %c0_i32_1 : i32, i32, i32
  }
  func.func @transform_3(%arg0: i32) -> (i32, i32, i32) {
    %c0_i32 = arith.constant 0 : i32
    %c0_i32_0 = arith.constant 0 : i32
    %c0_i32_1 = arith.constant 0 : i32
    return %arg0, %c0_i32, %c0_i32_0 : i32, i32, i32
  }
}

</mosaic_0001>

<bundles_post_ra>
// kernel: vit_embedding.1
= control target key start
LH: loop header
LB: loop body
LE: loop exit
PB: predicated region body
PF: predicated region fallthrough
CT: control target
= control target key end

     0   :  { %s383_s12 = smov 0   ;;  %s467_s0 = inlined_call_operand.vmem [shape: f32[2,16,768], index: 0, kind: input, shape index: {}]   ;;  %s468_s1 = inlined_call_operand.vmem [shape: f32[1,16,768], index: 1, kind: input, shape index: {}]   ;;  %s469_s2 = inlined_call_operand.vmem [shape: f32[1,1,768], index: 2, kind: input, shape index: {}]   ;;  %s470_s3 = inlined_call_operand.vmem [shape: f32[2,17,768], index: 3, kind: output, shape index: {}]  }
   0x1 LB: > { %s336_s13 = sadd.s32 4294967295, %s361_s12   ;;  %p340_p0 = scmp.ge.s32.totalorder %s361_s12, 1  ;;  %s361_s12 = sphi %s383_s12, %s13_s12  }
   0x2   : > { %p137_p1 = scmp.lt.s32.totalorder %s361_s12, 3 }
   0x4   : > { %p138_p2 = pnand %p340_p0, %p137_p1 }
   0x5   : > { %p161_p3 = scmp.lt.s32.totalorder (!%p138_p2), %s336_s13, 1  ;;  %v172_v0 = vlaneseq (!%p138_p2)  ;;  %v171_v1 = vld [vmem:[%s469_s2] sm:$0x3f] (!%p138_p2)  ;;  %v191_v3 = vld [vmem:[%s468_s1 + $0x8] sm:$0xff] (!%p138_p2)  ;;  %v192_v4 = vld [vmem:[%s468_s1 + $0x10] sm:$0xff] (!%p138_p2)  ;;  %vm226_vm1 = vcmask (!%p138_p2), 1040384  }
   0x6   : > { %141 = sbr.rel (%p138_p2) target bundleno = 32 (0x20), region = 32  ;;  %v190_v2 = vld [vmem:[%s468_s1] sm:$0xff] (!%p138_p2)  ;;  %v193_v5 = vld [vmem:[%s468_s1 + $0x18] sm:$0xff] (!%p138_p2)  ;;  %v195_v7 = vld [vmem:[%s468_s1 + $0x28] sm:$0xff] (!%p138_p2) }
   0x7   : > { %vm174_vm0 = vcmp.lt.s32.totalorder (!%p138_p2), %v172_v0, 768  ;;  %v194_v6 = vld [vmem:[%s468_s1 + $0x20] sm:$0xff] (!%p138_p2)  ;;  %v196_v8 = vld [vmem:[%s468_s1 + $0x30] sm:$0xff] (!%p138_p2)  ;;  %v197_v9 = vld [vmem:[%s468_s1 + $0x38] sm:$0xff] (!%p138_p2) }
   0x8   : > { %v198_v13 = vld [vmem:[%s468_s1 + $0x40] sm:$0xff] (!%p138_p2)  ;;  %v199_v14 = vld [vmem:[%s468_s1 + $0x48] sm:$0xff] (!%p138_p2)  ;;  %v200_v15 = vld [vmem:[%s468_s1 + $0x50] sm:$0xff] (!%p138_p2) }
   0x9   : > { %v201_v22 = vld [vmem:[%s468_s1 + $0x58] sm:$0xff] (!%p138_p2) }
   0xd   : > { %s472_s13 = smov (!%p161_p3, %s336_s13), 1 }
   0xe   : > { %s346_s14 = smul.u32 144, %s472_s13 }
   0xf   : > { %s345_s17 = smul.u32 96, %s472_s13 }
  0x10   : > { %s403_s24 = scalar_lea.vmem %s470_s3, %s346_s14 }
  0x11   : > { %176 = vst.msk [vmem:[%s403_s24] ss:$8 sm:$0xf] %vm174_vm0, %v171_v1  ;;  %177 = vst.msk [vmem:[%s403_s24] ss:$8 sm:$0x30] %vm174_vm0, %v171_v1  ;;  %s165_s6 = scalar_lea.vmem %s467_s0, %s345_s17 }
  0x12   : > { %v178_v10 = vld [vmem:[%s165_s6] sm:$0xff]  ;;  %v179_v11 = vld [vmem:[%s165_s6 + $0x8] sm:$0xff]  ;;  %v180_v12 = vld [vmem:[%s165_s6 + $0x10] sm:$0xff] }
  0x13   : > { %v202_v16 = vadd.f32 %v190_v2, %v178_v10  ;;  %v203_v17 = vadd.f32 %v191_v3, %v179_v11  ;;  %v204_v18 = vadd.f32 %v192_v4, %v180_v12  ;;  %v181_v19 = vld [vmem:[%s165_s6 + $0x18] sm:$0xff]  ;;  %v182_v20 = vld [vmem:[%s165_s6 + $0x20] sm:$0xff]  ;;  %v183_v21 = vld [vmem:[%s165_s6 + $0x28] sm:$0xff] }
  0x14   : > { %v205_v23 = vadd.f32 %v193_v5, %v181_v19  ;;  %v206_v24 = vadd.f32 %v194_v6, %v182_v20  ;;  %v207_v25 = vadd.f32 %v195_v7, %v183_v21  ;;  %v184_v26 = vld [vmem:[%s165_s6 + $0x30] sm:$0xff]  ;;  %v185_v27 = vld [vmem:[%s165_s6 + $0x38] sm:$0xff]  ;;  %v186_v28 = vld [vmem:[%s165_s6 + $0x40] sm:$0xff] }
  0x15   : > { %v227_v29 = vrot.slane %v202_v16, 7  ;;  %v228_v30 = vrot.slane %v203_v17, 7  ;;  %v229_v31 = vrot.slane %v204_v18, 7  ;;  %v208_v32 = vadd.f32 %v196_v8, %v184_v26  ;;  %v187_v33 = vld [vmem:[%s165_s6 + $0x48] sm:$0xff]  ;;  %v188_v34 = vld [vmem:[%s165_s6 + $0x50] sm:$0xff]  ;;  %v189_v35 = vld [vmem:[%s165_s6 + $0x58] sm:$0xff] }
  0x16   : > { %v230_v36 = vrot.slane %v205_v23, 7  ;;  %v231_v37 = vrot.slane %v206_v24, 7  ;;  %v232_v38 = vrot.slane %v207_v25, 7  ;;  %v209_v39 = vadd.f32 %v197_v9, %v185_v27 }
  0x17   : > { %263 = vst [vmem:[%s403_s24] sm:$0xfe] %v227_v29  ;;  %264 = vst [vmem:[%s403_s24 + $0x8] sm:$0xfe] %v228_v30  ;;  %v233_v40 = vrot.slane %v208_v32, 7  ;;  %v210_v41 = vadd.f32 %v198_v13, %v186_v28  ;;  %v211_v42 = vadd.f32 %v199_v14, %v187_v33  ;;  %v212_v43 = vadd.f32 %v200_v15, %v188_v34 }
  0x18   : > { %265 = vst [vmem:[%s403_s24 + $0x10] sm:$0xfe] %v229_v31  ;;  %266 = vst [vmem:[%s403_s24 + $0x18] sm:$0xfe] %v230_v36  ;;  %v235_v44 = vrot.slane %v209_v39, 7  ;;  %v213_v45 = vadd.f32 %v201_v22, %v189_v35 }
  0x19   : > { %267 = vst [vmem:[%s403_s24 + $0x20] sm:$0xfe] %v231_v37  ;;  %268 = vst [vmem:[%s403_s24 + $0x28] sm:$0xfe] %v232_v38  ;;  %v234_v46 = vsel %vm226_vm1, %v227_v29, %v233_v40  ;;  %v237_v47 = vrot.slane %v210_v41, 7  ;;  %v239_v48 = vrot.slane %v211_v42, 7 }
  0x1a   : > { %275 = vst [vmem:[%s403_s24 + $0x60] sm:$0x1] %v233_v40  ;;  %v241_v49 = vrot.slane %v212_v43, 7  ;;  %269 = vst [vmem:[%s403_s24 + $0x30] sm:$0xff] %v234_v46  ;;  %v236_v50 = vsel %vm226_vm1, %v228_v30, %v235_v44  ;;  %v243_v51 = vrot.slane %v213_v45, 7 }
  0x1b   : > { %276 = vst [vmem:[%s403_s24 + $0x68] sm:$0x1] %v235_v44  ;;  %270 = vst [vmem:[%s403_s24 + $0x38] sm:$0xff] %v236_v50  ;;  %v238_v52 = vsel %vm226_vm1, %v229_v31, %v237_v47  ;;  %v240_v53 = vsel %vm226_vm1, %v230_v36, %v239_v48 }
  0x1c   : > { %277 = vst [vmem:[%s403_s24 + $0x70] sm:$0x1] %v237_v47  ;;  %278 = vst [vmem:[%s403_s24 + $0x78] sm:$0x1] %v239_v48  ;;  %v242_v54 = vsel %vm226_vm1, %v231_v37, %v241_v49  ;;  %v244_v55 = vsel %vm226_vm1, %v232_v38, %v243_v51 }
  0x1d   : > { %279 = vst [vmem:[%s403_s24 + $0x80] sm:$0x1] %v241_v49  ;;  %271 = vst [vmem:[%s403_s24 + $0x40] sm:$0xff] %v238_v52 }
  0x1e   : > { %272 = vst [vmem:[%s403_s24 + $0x48] sm:$0xff] %v240_v53  ;;  %273 = vst [vmem:[%s403_s24 + $0x50] sm:$0xff] %v242_v54 }
  0x1f   : > { %280 = vst [vmem:[%s403_s24 + $0x88] sm:$0x1] %v243_v51  ;;  %274 = vst [vmem:[%s403_s24 + $0x58] sm:$0xff] %v244_v55 }
  0x20 PF: > { %s13_s12 = sadd.s32 1, %s361_s12  }
  0x21   : > { %p10_p4 = scmp.ge.s32.totalorder %s13_s12, 4  }
  0x23   :  { %12 = sbr.rel (!%p10_p4) target bundleno = 1 (0x1), region = 62 }

</bundles_post_ra>
